<compile_context>
chip_gen: v5e
topology: v5e:2x2
jax: 0.10.0
libtpu: 0.0.40
codegen_flags: <defaults>
</compile_context>

<pallas_src>
import jax
import jax.numpy as jnp
from jax.experimental import pallas as pl
from jax.experimental.pallas import tpu as pltpu

LANE = 128  # vreg lane width


def _standardize_kernel(s_ref, x_ref, o_ref):
    # s_ref is a (2,) f32 SMEM array: [mean, 1/std].  Scalar reads use the
    # scalar slot, so they are free relative to the VPU/DMA work.
    mean = s_ref[0]
    inv_std = s_ref[1]
    xv = x_ref[...].astype(jnp.float32)          # upcast: ~1 ulp vs true divide
    o_ref[...] = ((xv - mean) * inv_std).astype(o_ref.dtype)


def _round_up(a, b):
    return -(-a // b) * b


def _chip_config():
    """(target block bytes, tensorcores per chip, vmem_limit_bytes or None)."""
    kind = ""
    try:
        kind = jax.devices()[0].device_kind.lower()
    except Exception:
        pass
    if "v7" in kind or "7x" in kind:
        # v7x: 3.2 TB/s HBM, 64 MiB VMEM/TC, 2 TCs -> big blocks, raise scoped VMEM.
        return 8 << 20, 2, 48 << 20
    if "v6" in kind:
        # v6e: 1 TC, 32 MiB scoped-VMEM default -> 4 MiB blocks fit (4 bufs = 16 MiB).
        return 4 << 20, 1, None
    if "v4" in kind or "v5p" in kind:
        # Megacore chips: 2 TCs, keep conservative block size.
        return 2 << 20, 2, None
    # v5e / unknown: 16 MiB scoped-VMEM default -> 2 MiB blocks, single TC.
    return 2 << 20, 1, None


def _run_2d(x2d, scalars, dtype, itemsize, sub, block_bytes, cores, vmem_limit):
    """Run the kernel on a lane-dense (rows, LANE) slab."""
    rows = x2d.shape[0]
    n = rows * LANE
    cap_rows = max(sub, (block_bytes // (LANE * itemsize)) // sub * sub)

    if rows <= cap_rows:
        # Single block unless multi-TC sharding actually pays off.
        if cores > 1 and n * itemsize >= (1 << 20) and rows >= cores * sub:
            steps = cores
        else:
            steps = 1
    else:
        steps = pl.cdiv(rows, cap_rows)
        if cores > 1:
            # >= 2 steps per core and a step count divisible by the core count,
            # so both TensorCores stream near-full blocks (no idle ragged core).
            steps = _round_up(max(steps, 2 * cores), cores)

    block_rows = _round_up(pl.cdiv(rows, steps), sub)
    grid = (pl.cdiv(rows, block_rows),)

    return pl.pallas_call(
        _standardize_kernel,
        out_shape=jax.ShapeDtypeStruct((rows, LANE), dtype),
        grid=grid,
        in_specs=[
            pl.BlockSpec(memory_space=pltpu.MemorySpace.SMEM),   # [mean, 1/std]
            pl.BlockSpec((block_rows, LANE), lambda i: (i, 0)),
        ],
        out_specs=pl.BlockSpec((block_rows, LANE), lambda i: (i, 0)),
        compiler_params=pltpu.CompilerParams(
            dimension_semantics=("parallel",),
            vmem_limit_bytes=vmem_limit),
        cost_estimate=pl.CostEstimate(
            flops=2 * n, transcendentals=0, bytes_accessed=2 * n * itemsize),
    )(scalars, x2d)


def standardize(x, mean=0.369, std=0.0255, use_pallas=None):
    """(x - mean) / std.  use_pallas: None=auto (size heuristic), True/False=force."""
    orig_shape = x.shape
    dtype = x.dtype
    if not jnp.issubdtype(dtype, jnp.floating):
        # Match PyTorch's implicit promotion: int tensor - python float -> float.
        x = x.astype(jnp.float32)
        dtype = jnp.dtype(jnp.float32)
    itemsize = jnp.dtype(dtype).itemsize
    n = x.size
    inv_std = 1.0 / std

    small = n * itemsize < (256 << 10)
    if n == 0 or use_pallas is False or (use_pallas is None and small):
        # Tiny inputs: pallas_call fixed cost dominates; let XLA fuse two VPU ops.
        return ((x.astype(jnp.float32) - mean) * inv_std).astype(dtype)

    block_bytes, cores, vmem_limit = _chip_config()
    sub = max(8, 32 // itemsize)            # sublane packing: 8 f32, 16 bf16, 32 int8
    scalars = jnp.array([mean, inv_std], dtype=jnp.float32)
    flat = x.reshape(-1)
    head_n = (n // LANE) * LANE

    if head_n == n:
        # Pad-free fast path: any multiple of 128 elements (block_rows handles
        # the (8,128) divisibility; cdiv grid masks a ragged last row-block).
        out = _run_2d(flat.reshape(n // LANE, LANE), scalars, dtype, itemsize,
                      sub, block_bytes, cores, vmem_limit)
        return out.reshape(orig_shape)

    # Ragged size: aligned head through the kernel, <128-element tail in jnp.
    pieces = []
    if head_n > 0:
        head = flat[:head_n].reshape(head_n // LANE, LANE)
        pieces.append(_run_2d(head, scalars, dtype, itemsize,
                              sub, block_bytes, cores, vmem_limit).reshape(-1))
    tail = flat[head_n:]
    pieces.append(((tail.astype(jnp.float32) - mean) * inv_std).astype(dtype))
    return jnp.concatenate(pieces).reshape(orig_shape)


if __name__ == "__main__":
    mean, std = 0.369, 0.0255
    k0, k1, k2 = jax.random.split(jax.random.PRNGKey(0), 3)

    # 1) NCHW conv-activation-like input; force the Pallas path (pad-free, lane-dense).
    x = jax.random.normal(k0, (2, 4, 16, 16), dtype=jnp.float32)
    y = jax.block_until_ready(standardize(x, mean, std, use_pallas=True))
    assert y.shape == x.shape and y.dtype == x.dtype
    assert jnp.allclose(y, (x - mean) / std, rtol=1e-5, atol=1e-5)

    # 2) Ragged shape: aligned head via the kernel + tiny tail via jnp.
    x2 = jax.random.normal(k1, (3, 50, 7), dtype=jnp.float32)
    y2 = jax.block_until_ready(standardize(x2, mean, std, use_pallas=True))
    assert y2.shape == x2.shape and y2.dtype == x2.dtype
    assert jnp.allclose(y2, (x2 - mean) / std, rtol=1e-5, atol=1e-5)

    # 3) bf16 input: kernel computes in f32, casts on store.
    x3 = jax.random.normal(k2, (4, 8, 128), dtype=jnp.bfloat16)
    y3 = jax.block_until_ready(standardize(x3, mean, std, use_pallas=True))
    y3_ref = ((x3.astype(jnp.float32) - mean) / std).astype(jnp.bfloat16)
    assert y3.shape == x3.shape and y3.dtype == x3.dtype
    assert jnp.allclose(y3.astype(jnp.float32), y3_ref.astype(jnp.float32),
                        rtol=2e-2, atol=2e-2)

    # 4) Default auto path: tiny input takes the fused-jnp bypass.
    y4 = jax.block_until_ready(standardize(x, mean, std))
    assert jnp.allclose(y4, (x - mean) / std, rtol=1e-5, atol=1e-5)

    print("KERNEL_OK")
</pallas_src>

<mosaic_0001>
module attributes {stable_mosaic.version = 11 : i64} {
  func.func @_standardize_kernel(%arg0: i32, %arg1: memref<2xf32, #tpu.memory_space<smem>>, %arg2: memref<16x128xf32, #tpu.memory_space<vmem>>, %arg3: memref<16x128xf32, #tpu.memory_space<vmem>>) attributes {dimension_semantics = [#tpu.dimension_semantics<parallel>], iteration_bounds = array<i64: 1>, scalar_prefetch = 0 : i64, scratch_operands = 0 : i64, tpu.core_type = #tpu.core_type<tc>, window_params = [{transform_indices = @transform_0, window_bounds = array<i64: 2>}, {transform_indices = @transform_1, window_bounds = array<i64: 16, 128>}, {transform_indices = @transform_2, window_bounds = array<i64: 16, 128>}]} {
    %c0 = arith.constant 0 : index
    %0 = memref.load %arg1[%c0] : memref<2xf32, #tpu.memory_space<smem>>
    %c1 = arith.constant 1 : index
    %1 = memref.load %arg1[%c1] : memref<2xf32, #tpu.memory_space<smem>>
    %c0_0 = arith.constant 0 : index
    %c0_1 = arith.constant 0 : index
    %2 = vector.load %arg2[%c0_0, %c0_1] : memref<16x128xf32, #tpu.memory_space<vmem>>, vector<16x128xf32>
    %3 = vector.broadcast %0 : f32 to vector<16x128xf32>
    %4 = arith.subf %2, %3 : vector<16x128xf32>
    %5 = vector.broadcast %1 : f32 to vector<16x128xf32>
    %6 = arith.mulf %4, %5 : vector<16x128xf32>
    %c0_2 = arith.constant 0 : index
    %c0_3 = arith.constant 0 : index
    %7 = vector.load %arg3[%c0_2, %c0_3] : memref<16x128xf32, #tpu.memory_space<vmem>>, vector<16x128xf32>
    tpu.vector_store %arg3[%c0_2, %c0_3], %6 {strides = array<i32>} : memref<16x128xf32, #tpu.memory_space<vmem>>, vector<16x128xf32>,
    return
  }
  func.func @transform_0(%arg0: i32) -> i32 {
    %c0_i32 = arith.constant 0 : i32
    %c0_i32_0 = arith.constant 0 : i32
    return %c0_i32 : i32
  }
  func.func @transform_1(%arg0: i32) -> (i32, i32) {
    %c0_i32 = arith.constant 0 : i32
    %c0_i32_0 = arith.constant 0 : i32
    return %arg0, %c0_i32 : i32, i32
  }
  func.func @transform_2(%arg0: i32) -> (i32, i32) {
    %c0_i32 = arith.constant 0 : i32
    %c0_i32_0 = arith.constant 0 : i32
    return %arg0, %c0_i32 : i32, i32
  }
}

</mosaic_0001>

<bundles_post_ra>
// kernel: tpu_custom_call.1
= control target key start
LH: loop header
LB: loop body
LE: loop exit
PB: predicated region body
PF: predicated region fallthrough
CT: control target
= control target key end

     0   :  { %7 = vsyncpa [#allocation5], 0  ;;  %s174_s0 = inlined_call_operand.hbm [shape: f32[2], index: 0, kind: input, shape index: {}]   ;;  %s175_s1 = inlined_call_operand.hbm [shape: f32[16,128], index: 1, kind: input, shape index: {}]   ;;  %s176_s2 = inlined_call_operand.hbm [shape: f32[16,128], index: 2, kind: output, shape index: {}]  }
   0x1   :  { %8 = vsyncpa [#allocation3], 0 }
   0x2   :  { %9 = vsyncpa [#allocation4], 0  ;;  %s15_s11 = sshll.u32 %s174_s0, 4  ;;  %s23_s14 = sshll.u32 %s175_s1, 4  ;;  %s16_s11 = int_to_ptr.hbm [resolvable:$true] %s15_s11  ;;  %s24_s14 = int_to_ptr.hbm [resolvable:$true] %s23_s14 }
   0x3   :  { %s145_s15 = smov [#allocation2]   ;;  %s146_s16 = smov [#allocation6]  }
   0x4   :  { %18 = dma.hbm_to_smem %s16_s11, 16, %s145_s15, [#allocation5]  }
   0x5   :  { %s25_s17 = sshll.u32 %s146_s16, 4  ;;  %s147_s18 = smov 128   ;;  %s26_s17 = int_to_ptr.vmem [resolvable:$true] %s25_s17 }
   0x6   :  { %s148_s19 = smov 8  }
   0x7   :  { %31 = dma.hbm_to_vmem [thread:$0]  %s24_s14, 256, %s26_s17, [#allocation3], %s147_s18, %s147_s18, %s148_s19  }
   0x8   :  { %139 = dma.done.wait [#allocation5], 16  }
   0x9   :  { %140 = vsyncadd [#allocation5], 4294967280 }
   0xa   :  { %141 = dma.done.wait [#allocation3], 256  }
   0xb   :  { %142 = vsyncadd [#allocation3], 4294967040 }
   0xc   :  { %40 = sfence }
   0xd   :  { %s41_s0 = sld [smem:[#allocation2]]  ;;  %v43_v0 = vld [vmem:[#allocation6] sm:$0xff]  ;;  %v44_v1 = vld [vmem:[#allocation6 + $0x8] sm:$0xff]  ;;  %s149_s1 = smov [#allocation7]  }
   0xe   :  { %s73_s20 = sld [smem:[#allocation2 + $0x1]]  ;;  %s57_s21 = sshll.u32 %s149_s1, 4  ;;  %s58_s21 = int_to_ptr.vmem [resolvable:$true] %s57_s21 }
   0xf   :  { %s59_s24 = sshll.u32 %s176_s2, 4  ;;  %s60_s24 = int_to_ptr.hbm [resolvable:$true] %s59_s24 }
  0x13   :  { %v45_v2 = vstv %s41_s0 }
  0x14   :  { %v46_v3 = vsub.f32 %v43_v0, %v45_v2  ;;  %v48_v4 = vstv %s73_s20  ;;  %v47_v5 = vsub.f32 %v44_v1, %v45_v2 }
  0x16   :  { %v49_v6 = vmul.f32 %v48_v4, %v46_v3  ;;  %v50_v7 = vmul.f32 %v48_v4, %v47_v5 }
  0x18   :  { %51 = vst [vmem:[#allocation7] sm:$0xff] %v49_v6 }
  0x19   :  { %52 = vst [vmem:[#allocation7 + $0x8] sm:$0xff] %v50_v7 }
  0x1a   :  { %65 = dma.vmem_to_hbm [thread:$0]  %s58_s21, 256, %s60_s24, [#allocation4], %s147_s18, %s147_s18, %s148_s19  }
  0x1b   :  { %143 = dma.done.wait [#allocation4], 256  }
  0x1c   :  { %144 = vsyncadd [#allocation4], 4294967040 }
  0x1d   :  { %70 = vsyncpa [#allocation3], 1 }
  0x1e   :  { %71 = vsyncpa [#allocation4], 1 }
  0x1f   :  { %72 = vsyncpa [#allocation5], 1 }

</bundles_post_ra>
